<compile_context>
chip_gen: v7x
topology: tpu7x:2x2x1
jax: 0.10.0
libtpu: 0.0.40
codegen_flags: <defaults>
</compile_context>

<pallas_src>
import functools

import jax
import jax.numpy as jnp
from jax.experimental import pallas as pl
from jax.experimental.pallas import tpu as pltpu

MXU_DTYPE = jnp.bfloat16   # matmul-operand dtype (f32 accumulation everywhere)


# --------------------------- fused bi-GRU kernel ---------------------------- #

def _gru_cell(H, gi, h_prev, whh_ref, bhh_ref):
    """One GRU cell step. gi already contains x @ W_ih^T + b_ih (f32)."""
    gh = jnp.dot(h_prev.astype(whh_ref.dtype), whh_ref[...],
                 preferred_element_type=jnp.float32) + bhh_ref[...]     # (B, 3H)
    r = jax.nn.sigmoid(gi[:, 0:H] + gh[:, 0:H])
    z = jax.nn.sigmoid(gi[:, H:2 * H] + gh[:, H:2 * H])
    n = jnp.tanh(gi[:, 2 * H:3 * H] + r * gh[:, 2 * H:3 * H])
    return (1.0 - z) * n + z * h_prev


def _bigru_kernel(H, with_head, *refs):
    if with_head:
        (gi_f_ref, gi_b_ref, mf_ref, mb_ref,
         whh_f_ref, whh_b_ref, bhh_f_ref, bhh_b_ref,
         fcw_ref, fcb_ref, lnw_ref,
         out_f_ref, out_b_ref, dec_hid_ref, proj_ref,
         hf_scr, hb_scr) = refs
    else:
        (gi_f_ref, gi_b_ref, mf_ref, mb_ref,
         whh_f_ref, whh_b_ref, bhh_f_ref, bhh_b_ref,
         out_f_ref, out_b_ref, hf_scr, hb_scr) = refs

    t = pl.program_id(0)

    @pl.when(t == 0)
    def _():
        hf_scr[...] = jnp.zeros_like(hf_scr)
        hb_scr[...] = jnp.zeros_like(hb_scr)

    mf = mf_ref[...]                     # (B, 1) f32 in {0,1}: 1 = valid token
    mb = mb_ref[...]
    hf_prev = hf_scr[...]                # (B, H) f32
    hb_prev = hb_scr[...]

    hf_new = _gru_cell(H, gi_f_ref[...], hf_prev, whh_f_ref, bhh_f_ref)
    hb_new = _gru_cell(H, gi_b_ref[...], hb_prev, whh_b_ref, bhh_b_ref)

    # packed-sequence semantics: padded steps keep previous state
    hf_upd = mf * hf_new + (1.0 - mf) * hf_prev
    hb_upd = mb * hb_new + (1.0 - mb) * hb_prev

    out_f_ref[...] = (mf * hf_new).astype(out_f_ref.dtype)   # zeros at padding
    out_b_ref[...] = (mb * hb_new).astype(out_b_ref.dtype)

    hf_scr[...] = hf_upd
    hb_scr[...] = hb_upd

    if with_head:
        # fc / linear_normal applied to cat([h_fwd_final, h_bwd_final]) only at
        # the last grid step.  W[:H] / W[H:] split == cat(hf, hb) @ W.
        @pl.when(t == pl.num_programs(0) - 1)
        def _():
            dec_pre = (jnp.dot(hf_upd, fcw_ref[0:H, :],
                               preferred_element_type=jnp.float32)
                       + jnp.dot(hb_upd, fcw_ref[H:2 * H, :],
                                 preferred_element_type=jnp.float32)
                       + fcb_ref[...])
            dec_hid_ref[...] = jnp.tanh(dec_pre)
            proj_ref[...] = (jnp.dot(hf_upd, lnw_ref[0:H, :],
                                     preferred_element_type=jnp.float32)
                             + jnp.dot(hb_upd, lnw_ref[H:2 * H, :],
                                       preferred_element_type=jnp.float32))


def bigru_layer(gi_f, gi_b, mask, whh_f_t, whh_b_t, bhh_f, bhh_b, head=None):
    """Fused bidirectional masked-GRU layer over the full sequence.

    gi_f/gi_b: (T, B, 3H) precomputed input gates (incl. b_ih), f32.
    mask:      (T, B, 1) f32 validity mask.
    head:      optional (fc_w_t, fc_b, ln_w_t) applied to final hidden.
    """
    T, B, G3 = gi_f.shape
    H = G3 // 3
    with_head = head is not None

    resident = lambda t: (0, 0)
    fwd_t = lambda t: (t, 0, 0)
    bwd_t = lambda t: (T - 1 - t, 0, 0)

    in_specs = [
        pl.BlockSpec((None, B, 3 * H), fwd_t),    # gi_f  at time t
        pl.BlockSpec((None, B, 3 * H), bwd_t),    # gi_b  at time T-1-t
        pl.BlockSpec((None, B, 1), fwd_t),        # mask  at time t
        pl.BlockSpec((None, B, 1), bwd_t),        # mask  at time T-1-t
        pl.BlockSpec((H, 3 * H), resident),       # W_hh_fwd^T (bf16, resident)
        pl.BlockSpec((H, 3 * H), resident),       # W_hh_bwd^T (bf16, resident)
        pl.BlockSpec((1, 3 * H), resident),       # b_hh_fwd
        pl.BlockSpec((1, 3 * H), resident),       # b_hh_bwd
    ]
    inputs = [gi_f, gi_b, mask, mask,
              whh_f_t.astype(MXU_DTYPE), whh_b_t.astype(MXU_DTYPE),
              bhh_f, bhh_b]
    out_shape = [jax.ShapeDtypeStruct((T, B, H), jnp.float32),
                 jax.ShapeDtypeStruct((T, B, H), jnp.float32)]
    out_specs = [pl.BlockSpec((None, B, H), fwd_t),
                 pl.BlockSpec((None, B, H), bwd_t)]

    if with_head:
        fc_w_t, fc_b, ln_w_t = head
        D, E = fc_w_t.shape[1], ln_w_t.shape[1]
        in_specs += [pl.BlockSpec((2 * H, D), resident),
                     pl.BlockSpec((1, D), resident),
                     pl.BlockSpec((2 * H, E), resident)]
        inputs += [fc_w_t, fc_b, ln_w_t]
        out_shape += [jax.ShapeDtypeStruct((B, D), jnp.float32),
                      jax.ShapeDtypeStruct((B, E), jnp.float32)]
        out_specs += [pl.BlockSpec((B, D), resident),
                      pl.BlockSpec((B, E), resident)]

    kernel = functools.partial(_bigru_kernel, H, with_head)
    return pl.pallas_call(
        kernel,
        out_shape=tuple(out_shape),
        grid_spec=pltpu.PrefetchScalarGridSpec(
            num_scalar_prefetch=0,
            grid=(T,),
            in_specs=in_specs,
            out_specs=tuple(out_specs),
            scratch_shapes=[pltpu.VMEM((B, H), jnp.float32),   # h_fwd carry
                            pltpu.VMEM((B, H), jnp.float32)],  # h_bwd carry
        ),
        compiler_params=pltpu.CompilerParams(
            dimension_semantics=("arbitrary",)),               # serial in time
    )(*inputs)


# ---------------------- hoisted input projection (GI) ----------------------- #

def _layer_input_projection(xs, w_ih_t, b_ih):
    """GI = concat(xs, -1) @ W_ih^T + b_ih computed as one big bf16 matmul
    per input chunk (avoids materializing the fwd/bwd concat between layers)."""
    off = 0
    acc = None
    for x in xs:
        In = x.shape[-1]
        part = jnp.dot(x.reshape(-1, In).astype(MXU_DTYPE),
                       w_ih_t[off:off + In].astype(MXU_DTYPE),
                       preferred_element_type=jnp.float32)
        acc = part if acc is None else acc + part
        off += In
    T, B = xs[0].shape[0], xs[0].shape[1]
    return (acc + b_ih).reshape(T, B, -1)


# ------------------------------ forward pass -------------------------------- #

def encoder_forward(params, src, lengths, topics, *, max_len=None):
    embed_table = params['embed']
    B, T = src.shape

    # embedding gather (XLA glue); dropout == identity in eval mode
    embedded = embed_table[src]                        # (B, T, E)
    x = jnp.transpose(embedded, (1, 0, 2))             # time-major (T, B, E)

    # (T, B, 1) validity mask, computed once, streamed per step into the kernel
    time_ids = jnp.arange(T, dtype=jnp.int32)[:, None, None]
    mask = (time_ids < lengths.reshape(1, B, 1).astype(jnp.int32)).astype(jnp.float32)

    n_layers = len(params['gru'])
    feats = (x,)
    out_f = out_b = dec_hid = proj = None
    for li, layer in enumerate(params['gru']):
        gi_f = _layer_input_projection(feats, layer['wih_f_t'], layer['bih_f'])
        gi_b = _layer_input_projection(feats, layer['wih_b_t'], layer['bih_b'])
        head = ((params['fc_w_t'], params['fc_b'], params['ln_w_t'])
                if li == n_layers - 1 else None)
        outs = bigru_layer(gi_f, gi_b, mask,
                           layer['whh_f_t'], layer['whh_b_t'],
                           layer['bhh_f'], layer['bhh_b'], head=head)
        if head is None:
            out_f, out_b = outs
        else:
            out_f, out_b, dec_hid, proj = outs
        feats = (out_f, out_b)

    out = jnp.concatenate([out_f, out_b], axis=-1)     # (T, B, 2H)
    out = jnp.transpose(out, (1, 0, 2))                # (B, T, 2H)
    if max_len is not None:                            # pad_packed -> max(lengths)
        out = out[:, :max_len]

    topic_embed = jnp.concatenate(
        [proj[:, None, :], embed_table[topics]], axis=1)   # (B, 1+Ntopic, E)
    hid_out = dec_hid[None, :, :]                          # (1, B, D)
    return out, hid_out, topic_embed


# ------------------------------- parameters --------------------------------- #

def init_params(key, vocab_size, E, H, D, num_layers):
    keys = iter(jax.random.split(key, 8 * num_layers + 8))

    def u(shape, scale):
        return jax.random.uniform(next(keys), shape, jnp.float32, -scale, scale)

    params = {'embed': u((vocab_size, E), 0.1)}
    s = float(1.0 / (H ** 0.5))
    gru = []
    for l in range(num_layers):
        In = E if l == 0 else 2 * H
        gru.append({
            'wih_f_t': u((In, 3 * H), s), 'whh_f_t': u((H, 3 * H), s),
            'bih_f':   u((1, 3 * H), s),  'bhh_f':   u((1, 3 * H), s),
            'wih_b_t': u((In, 3 * H), s), 'whh_b_t': u((H, 3 * H), s),
            'bih_b':   u((1, 3 * H), s),  'bhh_b':   u((1, 3 * H), s),
        })
    params['gru'] = gru

    sf = float(1.0 / ((2 * H) ** 0.5))
    params['fc_w_t'] = u((2 * H, D), sf)     # fc.weight^T
    params['fc_b'] = u((1, D), sf)           # fc.bias
    params['ln_w_t'] = u((2 * H, E), sf)     # linear_normal.weight^T (no bias)
    return params


# ---------------------------------- main ------------------------------------ #

if __name__ == "__main__":
    vocab_size, E, H, D = 50, 16, 32, 32
    num_layers = 1
    B, T, Ntopic = 2, 8, 3

    key = jax.random.PRNGKey(0)
    kp, ks, kt = jax.random.split(key, 3)

    params = init_params(kp, vocab_size, E, H, D, num_layers)
    src = jax.random.randint(ks, (B, T), 0, vocab_size, dtype=jnp.int32)
    topics = jax.random.randint(kt, (B, Ntopic), 0, vocab_size, dtype=jnp.int32)
    lengths = jnp.array([8, 5], dtype=jnp.int32)

    # static max(lengths) -> no device->host sync inside the jitted forward
    max_len = int(lengths.max())

    fwd = jax.jit(encoder_forward, static_argnames=('max_len',))
    out, hid, topic_embed = fwd(params, src, lengths, topics, max_len=max_len)
    jax.block_until_ready((out, hid, topic_embed))

    assert out.shape == (B, max_len, 2 * H)
    assert hid.shape == (1, B, D)
    assert topic_embed.shape == (B, 1 + Ntopic, E)
    print("KERNEL_OK")
</pallas_src>

<mosaic_0001>
module attributes {stable_mosaic.version = 11 : i64} {
  func.func @_bigru_kernel(%arg0: i32, %arg1: memref<1x2x96xf32, #tpu.memory_space<vmem>>, %arg2: memref<1x2x96xf32, #tpu.memory_space<vmem>>, %arg3: memref<1x2x1xf32, #tpu.memory_space<vmem>>, %arg4: memref<1x2x1xf32, #tpu.memory_space<vmem>>, %arg5: memref<32x96xbf16, #tpu.memory_space<vmem>>, %arg6: memref<32x96xbf16, #tpu.memory_space<vmem>>, %arg7: memref<1x96xf32, #tpu.memory_space<vmem>>, %arg8: memref<1x96xf32, #tpu.memory_space<vmem>>, %arg9: memref<64x32xf32, #tpu.memory_space<vmem>>, %arg10: memref<1x32xf32, #tpu.memory_space<vmem>>, %arg11: memref<64x16xf32, #tpu.memory_space<vmem>>, %arg12: memref<1x2x32xf32, #tpu.memory_space<vmem>>, %arg13: memref<1x2x32xf32, #tpu.memory_space<vmem>>, %arg14: memref<2x32xf32, #tpu.memory_space<vmem>>, %arg15: memref<2x16xf32, #tpu.memory_space<vmem>>, %arg16: memref<2x32xf32, #tpu.memory_space<vmem>>, %arg17: memref<2x32xf32, #tpu.memory_space<vmem>>) attributes {dimension_semantics = [#tpu.dimension_semantics<arbitrary>], iteration_bounds = array<i64: 8>, scalar_prefetch = 0 : i64, scratch_operands = 2 : i64, tpu.core_type = #tpu.core_type<tc>, window_params = [{transform_indices = @transform_0, window_bounds = array<i64: 1, 2, 96>}, {transform_indices = @transform_1, window_bounds = array<i64: 1, 2, 96>}, {transform_indices = @transform_2, window_bounds = array<i64: 1, 2, 1>}, {transform_indices = @transform_3, window_bounds = array<i64: 1, 2, 1>}, {pipeline_mode = #tpu.pipeline_mode<synchronous>, transform_indices = @transform_4, window_bounds = array<i64: 32, 96>}, {pipeline_mode = #tpu.pipeline_mode<synchronous>, transform_indices = @transform_5, window_bounds = array<i64: 32, 96>}, {pipeline_mode = #tpu.pipeline_mode<synchronous>, transform_indices = @transform_6, window_bounds = array<i64: 1, 96>}, {pipeline_mode = #tpu.pipeline_mode<synchronous>, transform_indices = @transform_7, window_bounds = array<i64: 1, 96>}, {pipeline_mode = #tpu.pipeline_mode<synchronous>, transform_indices = @transform_8, window_bounds = array<i64: 64, 32>}, {pipeline_mode = #tpu.pipeline_mode<synchronous>, transform_indices = @transform_9, window_bounds = array<i64: 1, 32>}, {pipeline_mode = #tpu.pipeline_mode<synchronous>, transform_indices = @transform_10, window_bounds = array<i64: 64, 16>}, {transform_indices = @transform_11, window_bounds = array<i64: 1, 2, 32>}, {transform_indices = @transform_12, window_bounds = array<i64: 1, 2, 32>}, {pipeline_mode = #tpu.pipeline_mode<synchronous>, transform_indices = @transform_13, window_bounds = array<i64: 2, 32>}, {pipeline_mode = #tpu.pipeline_mode<synchronous>, transform_indices = @transform_14, window_bounds = array<i64: 2, 16>}]} {
    %c0_i32 = arith.constant 0 : i32
    %0 = arith.cmpi eq, %arg0, %c0_i32 : i32
    %1 = arith.extui %0 : i1 to i32
    %c0_i32_0 = arith.constant 0 : i32
    %2 = arith.cmpi ne, %1, %c0_i32_0 : i32
    scf.if %2 {
      %cst_44 = arith.constant 0.000000e+00 : f32
      %106 = vector.broadcast %cst_44 : f32 to vector<2x32xf32>
      %c0_45 = arith.constant 0 : index
      %c0_46 = arith.constant 0 : index
      %107 = vector.load %arg16[%c0_45, %c0_46] : memref<2x32xf32, #tpu.memory_space<vmem>>, vector<2x32xf32>
      tpu.vector_store %arg16[%c0_45, %c0_46], %106 {strides = array<i32>} : memref<2x32xf32, #tpu.memory_space<vmem>>, vector<2x32xf32>,
      %cst_47 = arith.constant 0.000000e+00 : f32
      %108 = vector.broadcast %cst_47 : f32 to vector<2x32xf32>
      %c0_48 = arith.constant 0 : index
      %c0_49 = arith.constant 0 : index
      %109 = vector.load %arg17[%c0_48, %c0_49] : memref<2x32xf32, #tpu.memory_space<vmem>>, vector<2x32xf32>
      tpu.vector_store %arg17[%c0_48, %c0_49], %108 {strides = array<i32>} : memref<2x32xf32, #tpu.memory_space<vmem>>, vector<2x32xf32>,
    } else {
    }
    %c0 = arith.constant 0 : index
    %c0_1 = arith.constant 0 : index
    %c0_2 = arith.constant 0 : index
    %3 = vector.load %arg3[%c0, %c0_1, %c0_2] : memref<1x2x1xf32, #tpu.memory_space<vmem>>, vector<1x2x1xf32>
    %4 = vector.shape_cast %3 : vector<1x2x1xf32> to vector<2x1xf32>
    %c0_3 = arith.constant 0 : index
    %c0_4 = arith.constant 0 : index
    %c0_5 = arith.constant 0 : index
    %5 = vector.load %arg4[%c0_3, %c0_4, %c0_5] : memref<1x2x1xf32, #tpu.memory_space<vmem>>, vector<1x2x1xf32>
    %6 = vector.shape_cast %5 : vector<1x2x1xf32> to vector<2x1xf32>
    %c0_6 = arith.constant 0 : index
    %c0_7 = arith.constant 0 : index
    %7 = vector.load %arg16[%c0_6, %c0_7] : memref<2x32xf32, #tpu.memory_space<vmem>>, vector<2x32xf32>
    %c0_8 = arith.constant 0 : index
    %c0_9 = arith.constant 0 : index
    %8 = vector.load %arg17[%c0_8, %c0_9] : memref<2x32xf32, #tpu.memory_space<vmem>>, vector<2x32xf32>
    %c0_10 = arith.constant 0 : index
    %c0_11 = arith.constant 0 : index
    %c0_12 = arith.constant 0 : index
    %9 = vector.load %arg1[%c0_10, %c0_11, %c0_12] : memref<1x2x96xf32, #tpu.memory_space<vmem>>, vector<1x2x96xf32>
    %10 = vector.shape_cast %9 : vector<1x2x96xf32> to vector<2x96xf32>
    %11 = arith.truncf %7 : vector<2x32xf32> to vector<2x32xbf16>
    %c0_13 = arith.constant 0 : index
    %c0_14 = arith.constant 0 : index
    %12 = vector.load %arg5[%c0_13, %c0_14] : memref<32x96xbf16, #tpu.memory_space<vmem>>, vector<32x96xbf16>
    %cst = arith.constant dense<0.000000e+00> : vector<2x96xf32>
    %13 = tpu.matmul %11, %12, %cst {dimension_numbers = #tpu.dot_dimension_numbers<[1], [0], [0], [1], [0, 0, 1, 1], [], []>} : vector<2x32xbf16>, vector<32x96xbf16>, vector<2x96xf32> -> vector<2x96xf32>
    %c0_15 = arith.constant 0 : index
    %c0_16 = arith.constant 0 : index
    %14 = vector.load %arg7[%c0_15, %c0_16] : memref<1x96xf32, #tpu.memory_space<vmem>>, vector<1x96xf32>
    %15 = vector.broadcast %14 : vector<1x96xf32> to vector<2x96xf32>
    %16 = arith.addf %13, %15 : vector<2x96xf32>
    %17 = vector.extract_strided_slice %10 {offsets = [0, 0], sizes = [2, 32], strides = [1, 1]} : vector<2x96xf32> to vector<2x32xf32>
    %18 = vector.extract_strided_slice %16 {offsets = [0, 0], sizes = [2, 32], strides = [1, 1]} : vector<2x96xf32> to vector<2x32xf32>
    %19 = arith.addf %17, %18 : vector<2x32xf32>
    %20 = arith.negf %19 : vector<2x32xf32>
    %21 = math.exp %20 : vector<2x32xf32>
    %cst_17 = arith.constant 1.000000e+00 : f32
    %22 = vector.broadcast %cst_17 : f32 to vector<2x32xf32>
    %23 = arith.addf %22, %21 : vector<2x32xf32>
    %24 = arith.divf %22, %23 : vector<2x32xf32>
    %25 = vector.extract_strided_slice %10 {offsets = [0, 32], sizes = [2, 32], strides = [1, 1]} : vector<2x96xf32> to vector<2x32xf32>
    %26 = vector.extract_strided_slice %16 {offsets = [0, 32], sizes = [2, 32], strides = [1, 1]} : vector<2x96xf32> to vector<2x32xf32>
    %27 = arith.addf %25, %26 : vector<2x32xf32>
    %28 = arith.negf %27 : vector<2x32xf32>
    %29 = math.exp %28 : vector<2x32xf32>
    %cst_18 = arith.constant 1.000000e+00 : f32
    %30 = vector.broadcast %cst_18 : f32 to vector<2x32xf32>
    %31 = arith.addf %30, %29 : vector<2x32xf32>
    %32 = arith.divf %30, %31 : vector<2x32xf32>
    %33 = vector.extract_strided_slice %10 {offsets = [0, 64], sizes = [2, 32], strides = [1, 1]} : vector<2x96xf32> to vector<2x32xf32>
    %34 = vector.extract_strided_slice %16 {offsets = [0, 64], sizes = [2, 32], strides = [1, 1]} : vector<2x96xf32> to vector<2x32xf32>
    %35 = arith.mulf %24, %34 : vector<2x32xf32>
    %36 = arith.addf %33, %35 : vector<2x32xf32>
    %37 = math.tanh %36 : vector<2x32xf32>
    %cst_19 = arith.constant 1.000000e+00 : f32
    %38 = vector.broadcast %cst_19 : f32 to vector<2x32xf32>
    %39 = arith.subf %38, %32 : vector<2x32xf32>
    %40 = arith.mulf %39, %37 : vector<2x32xf32>
    %41 = arith.mulf %32, %7 : vector<2x32xf32>
    %42 = arith.addf %40, %41 : vector<2x32xf32>
    %c0_20 = arith.constant 0 : index
    %c0_21 = arith.constant 0 : index
    %c0_22 = arith.constant 0 : index
    %43 = vector.load %arg2[%c0_20, %c0_21, %c0_22] : memref<1x2x96xf32, #tpu.memory_space<vmem>>, vector<1x2x96xf32>
    %44 = vector.shape_cast %43 : vector<1x2x96xf32> to vector<2x96xf32>
    %45 = arith.truncf %8 : vector<2x32xf32> to vector<2x32xbf16>
    %c0_23 = arith.constant 0 : index
    %c0_24 = arith.constant 0 : index
    %46 = vector.load %arg6[%c0_23, %c0_24] : memref<32x96xbf16, #tpu.memory_space<vmem>>, vector<32x96xbf16>
    %cst_25 = arith.constant dense<0.000000e+00> : vector<2x96xf32>
    %47 = tpu.matmul %45, %46, %cst_25 {dimension_numbers = #tpu.dot_dimension_numbers<[1], [0], [0], [1], [0, 0, 1, 1], [], []>} : vector<2x32xbf16>, vector<32x96xbf16>, vector<2x96xf32> -> vector<2x96xf32>
    %c0_26 = arith.constant 0 : index
    %c0_27 = arith.constant 0 : index
    %48 = vector.load %arg8[%c0_26, %c0_27] : memref<1x96xf32, #tpu.memory_space<vmem>>, vector<1x96xf32>
    %49 = vector.broadcast %48 : vector<1x96xf32> to vector<2x96xf32>
    %50 = arith.addf %47, %49 : vector<2x96xf32>
    %51 = vector.extract_strided_slice %44 {offsets = [0, 0], sizes = [2, 32], strides = [1, 1]} : vector<2x96xf32> to vector<2x32xf32>
    %52 = vector.extract_strided_slice %50 {offsets = [0, 0], sizes = [2, 32], strides = [1, 1]} : vector<2x96xf32> to vector<2x32xf32>
    %53 = arith.addf %51, %52 : vector<2x32xf32>
    %54 = arith.negf %53 : vector<2x32xf32>
    %55 = math.exp %54 : vector<2x32xf32>
    %cst_28 = arith.constant 1.000000e+00 : f32
    %56 = vector.broadcast %cst_28 : f32 to vector<2x32xf32>
    %57 = arith.addf %56, %55 : vector<2x32xf32>
    %58 = arith.divf %56, %57 : vector<2x32xf32>
    %59 = vector.extract_strided_slice %44 {offsets = [0, 32], sizes = [2, 32], strides = [1, 1]} : vector<2x96xf32> to vector<2x32xf32>
    %60 = vector.extract_strided_slice %50 {offsets = [0, 32], sizes = [2, 32], strides = [1, 1]} : vector<2x96xf32> to vector<2x32xf32>
    %61 = arith.addf %59, %60 : vector<2x32xf32>
    %62 = arith.negf %61 : vector<2x32xf32>
    %63 = math.exp %62 : vector<2x32xf32>
    %cst_29 = arith.constant 1.000000e+00 : f32
    %64 = vector.broadcast %cst_29 : f32 to vector<2x32xf32>
    %65 = arith.addf %64, %63 : vector<2x32xf32>
    %66 = arith.divf %64, %65 : vector<2x32xf32>
    %67 = vector.extract_strided_slice %44 {offsets = [0, 64], sizes = [2, 32], strides = [1, 1]} : vector<2x96xf32> to vector<2x32xf32>
    %68 = vector.extract_strided_slice %50 {offsets = [0, 64], sizes = [2, 32], strides = [1, 1]} : vector<2x96xf32> to vector<2x32xf32>
    %69 = arith.mulf %58, %68 : vector<2x32xf32>
    %70 = arith.addf %67, %69 : vector<2x32xf32>
    %71 = math.tanh %70 : vector<2x32xf32>
    %cst_30 = arith.constant 1.000000e+00 : f32
    %72 = vector.broadcast %cst_30 : f32 to vector<2x32xf32>
    %73 = arith.subf %72, %66 : vector<2x32xf32>
    %74 = arith.mulf %73, %71 : vector<2x32xf32>
    %75 = arith.mulf %66, %8 : vector<2x32xf32>
    %76 = arith.addf %74, %75 : vector<2x32xf32>
    %77 = vector.broadcast %4 : vector<2x1xf32> to vector<2x32xf32>
    %78 = arith.mulf %77, %42 : vector<2x32xf32>
    %cst_31 = arith.constant 1.000000e+00 : f32
    %79 = vector.broadcast %cst_31 : f32 to vector<2x1xf32>
    %80 = arith.subf %79, %4 : vector<2x1xf32>
    %81 = vector.broadcast %80 : vector<2x1xf32> to vector<2x32xf32>
    %82 = arith.mulf %81, %7 : vector<2x32xf32>
    %83 = arith.addf %78, %82 : vector<2x32xf32>
    %84 = vector.broadcast %6 : vector<2x1xf32> to vector<2x32xf32>
    %85 = arith.mulf %84, %76 : vector<2x32xf32>
    %cst_32 = arith.constant 1.000000e+00 : f32
    %86 = vector.broadcast %cst_32 : f32 to vector<2x1xf32>
    %87 = arith.subf %86, %6 : vector<2x1xf32>
    %88 = vector.broadcast %87 : vector<2x1xf32> to vector<2x32xf32>
    %89 = arith.mulf %88, %8 : vector<2x32xf32>
    %90 = arith.addf %85, %89 : vector<2x32xf32>
    %91 = vector.broadcast %4 : vector<2x1xf32> to vector<2x32xf32>
    %92 = arith.mulf %91, %42 : vector<2x32xf32>
    %c0_33 = arith.constant 0 : index
    %c0_34 = arith.constant 0 : index
    %c0_35 = arith.constant 0 : index
    %93 = vector.load %arg12[%c0_33, %c0_34, %c0_35] : memref<1x2x32xf32, #tpu.memory_space<vmem>>, vector<1x2x32xf32>
    %94 = vector.shape_cast %93 : vector<1x2x32xf32> to vector<2x32xf32>
    %95 = vector.shape_cast %92 : vector<2x32xf32> to vector<1x2x32xf32>
    tpu.vector_store %arg12[%c0_33, %c0_34, %c0_35], %95 {strides = array<i32>} : memref<1x2x32xf32, #tpu.memory_space<vmem>>, vector<1x2x32xf32>,
    %96 = vector.broadcast %6 : vector<2x1xf32> to vector<2x32xf32>
    %97 = arith.mulf %96, %76 : vector<2x32xf32>
    %c0_36 = arith.constant 0 : index
    %c0_37 = arith.constant 0 : index
    %c0_38 = arith.constant 0 : index
    %98 = vector.load %arg13[%c0_36, %c0_37, %c0_38] : memref<1x2x32xf32, #tpu.memory_space<vmem>>, vector<1x2x32xf32>
    %99 = vector.shape_cast %98 : vector<1x2x32xf32> to vector<2x32xf32>
    %100 = vector.shape_cast %97 : vector<2x32xf32> to vector<1x2x32xf32>
    tpu.vector_store %arg13[%c0_36, %c0_37, %c0_38], %100 {strides = array<i32>} : memref<1x2x32xf32, #tpu.memory_space<vmem>>, vector<1x2x32xf32>,
    %c0_39 = arith.constant 0 : index
    %c0_40 = arith.constant 0 : index
    %101 = vector.load %arg16[%c0_39, %c0_40] : memref<2x32xf32, #tpu.memory_space<vmem>>, vector<2x32xf32>
    tpu.vector_store %arg16[%c0_39, %c0_40], %83 {strides = array<i32>} : memref<2x32xf32, #tpu.memory_space<vmem>>, vector<2x32xf32>,
    %c0_41 = arith.constant 0 : index
    %c0_42 = arith.constant 0 : index
    %102 = vector.load %arg17[%c0_41, %c0_42] : memref<2x32xf32, #tpu.memory_space<vmem>>, vector<2x32xf32>
    tpu.vector_store %arg17[%c0_41, %c0_42], %90 {strides = array<i32>} : memref<2x32xf32, #tpu.memory_space<vmem>>, vector<2x32xf32>,
    %c7_i32 = arith.constant 7 : i32
    %103 = arith.cmpi eq, %arg0, %c7_i32 : i32
    %104 = arith.extui %103 : i1 to i32
    %c0_i32_43 = arith.constant 0 : i32
    %105 = arith.cmpi ne, %104, %c0_i32_43 : i32
    scf.if %105 {
      %c0_44 = arith.constant 0 : index
      %c0_45 = arith.constant 0 : index
      %106 = vector.load %arg9[%c0_44, %c0_45] : memref<64x32xf32, #tpu.memory_space<vmem>>, vector<32x32xf32>
      %cst_46 = arith.constant dense<0.000000e+00> : vector<2x32xf32>
      %107 = tpu.matmul %83, %106, %cst_46 {dimension_numbers = #tpu.dot_dimension_numbers<[1], [0], [0], [1], [0, 0, 1, 1], [], []>} : vector<2x32xf32>, vector<32x32xf32>, vector<2x32xf32> -> vector<2x32xf32>
      %c32 = arith.constant 32 : index
      %c0_47 = arith.constant 0 : index
      %108 = vector.load %arg9[%c32, %c0_47] : memref<64x32xf32, #tpu.memory_space<vmem>>, vector<32x32xf32>
      %cst_48 = arith.constant dense<0.000000e+00> : vector<2x32xf32>
      %109 = tpu.matmul %90, %108, %cst_48 {dimension_numbers = #tpu.dot_dimension_numbers<[1], [0], [0], [1], [0, 0, 1, 1], [], []>} : vector<2x32xf32>, vector<32x32xf32>, vector<2x32xf32> -> vector<2x32xf32>
      %110 = arith.addf %107, %109 : vector<2x32xf32>
      %c0_49 = arith.constant 0 : index
      %c0_50 = arith.constant 0 : index
      %111 = vector.load %arg10[%c0_49, %c0_50] : memref<1x32xf32, #tpu.memory_space<vmem>>, vector<1x32xf32>
      %112 = vector.broadcast %111 : vector<1x32xf32> to vector<2x32xf32>
      %113 = arith.addf %110, %112 : vector<2x32xf32>
      %114 = math.tanh %113 : vector<2x32xf32>
      %c0_51 = arith.constant 0 : index
      %c0_52 = arith.constant 0 : index
      %115 = vector.load %arg14[%c0_51, %c0_52] : memref<2x32xf32, #tpu.memory_space<vmem>>, vector<2x32xf32>
      tpu.vector_store %arg14[%c0_51, %c0_52], %114 {strides = array<i32>} : memref<2x32xf32, #tpu.memory_space<vmem>>, vector<2x32xf32>,
      %c0_53 = arith.constant 0 : index
      %c0_54 = arith.constant 0 : index
      %116 = vector.load %arg11[%c0_53, %c0_54] : memref<64x16xf32, #tpu.memory_space<vmem>>, vector<32x16xf32>
      %cst_55 = arith.constant dense<0.000000e+00> : vector<2x16xf32>
      %117 = tpu.matmul %83, %116, %cst_55 {dimension_numbers = #tpu.dot_dimension_numbers<[1], [0], [0], [1], [0, 0, 1, 1], [], []>} : vector<2x32xf32>, vector<32x16xf32>, vector<2x16xf32> -> vector<2x16xf32>
      %c32_56 = arith.constant 32 : index
      %c0_57 = arith.constant 0 : index
      %118 = vector.load %arg11[%c32_56, %c0_57] : memref<64x16xf32, #tpu.memory_space<vmem>>, vector<32x16xf32>
      %cst_58 = arith.constant dense<0.000000e+00> : vector<2x16xf32>
      %119 = tpu.matmul %90, %118, %cst_58 {dimension_numbers = #tpu.dot_dimension_numbers<[1], [0], [0], [1], [0, 0, 1, 1], [], []>} : vector<2x32xf32>, vector<32x16xf32>, vector<2x16xf32> -> vector<2x16xf32>
      %120 = arith.addf %117, %119 : vector<2x16xf32>
      %c0_59 = arith.constant 0 : index
      %c0_60 = arith.constant 0 : index
      %121 = vector.load %arg15[%c0_59, %c0_60] : memref<2x16xf32, #tpu.memory_space<vmem>>, vector<2x16xf32>
      tpu.vector_store %arg15[%c0_59, %c0_60], %120 {strides = array<i32>} : memref<2x16xf32, #tpu.memory_space<vmem>>, vector<2x16xf32>,
    } else {
    }
    return
  }
  func.func @transform_0(%arg0: i32) -> (i32, i32, i32) {
    %c0_i32 = arith.constant 0 : i32
    %c0_i32_0 = arith.constant 0 : i32
    %c0_i32_1 = arith.constant 0 : i32
    return %arg0, %c0_i32, %c0_i32_0 : i32, i32, i32
  }
  func.func @transform_1(%arg0: i32) -> (i32, i32, i32) {
    %c7_i32 = arith.constant 7 : i32
    %0 = arith.subi %c7_i32, %arg0 : i32
    %c0_i32 = arith.constant 0 : i32
    %c0_i32_0 = arith.constant 0 : i32
    %c0_i32_1 = arith.constant 0 : i32
    return %0, %c0_i32, %c0_i32_0 : i32, i32, i32
  }
  func.func @transform_2(%arg0: i32) -> (i32, i32, i32) {
    %c0_i32 = arith.constant 0 : i32
    %c0_i32_0 = arith.constant 0 : i32
    %c0_i32_1 = arith.constant 0 : i32
    return %arg0, %c0_i32, %c0_i32_0 : i32, i32, i32
  }
  func.func @transform_3(%arg0: i32) -> (i32, i32, i32) {
    %c7_i32 = arith.constant 7 : i32
    %0 = arith.subi %c7_i32, %arg0 : i32
    %c0_i32 = arith.constant 0 : i32
    %c0_i32_0 = arith.constant 0 : i32
    %c0_i32_1 = arith.constant 0 : i32
    return %0, %c0_i32, %c0_i32_0 : i32, i32, i32
  }
  func.func @transform_4(%arg0: i32) -> (i32, i32) {
    %c0_i32 = arith.constant 0 : i32
    %c0_i32_0 = arith.constant 0 : i32
    %c0_i32_1 = arith.constant 0 : i32
    return %c0_i32, %c0_i32_0 : i32, i32
  }
  func.func @transform_5(%arg0: i32) -> (i32, i32) {
    %c0_i32 = arith.constant 0 : i32
    %c0_i32_0 = arith.constant 0 : i32
    %c0_i32_1 = arith.constant 0 : i32
    return %c0_i32, %c0_i32_0 : i32, i32
  }
  func.func @transform_6(%arg0: i32) -> (i32, i32) {
    %c0_i32 = arith.constant 0 : i32
    %c0_i32_0 = arith.constant 0 : i32
    %c0_i32_1 = arith.constant 0 : i32
    return %c0_i32, %c0_i32_0 : i32, i32
  }
  func.func @transform_7(%arg0: i32) -> (i32, i32) {
    %c0_i32 = arith.constant 0 : i32
    %c0_i32_0 = arith.constant 0 : i32
    %c0_i32_1 = arith.constant 0 : i32
    return %c0_i32, %c0_i32_0 : i32, i32
  }
  func.func @transform_8(%arg0: i32) -> (i32, i32) {
    %c0_i32 = arith.constant 0 : i32
    %c0_i32_0 = arith.constant 0 : i32
    %c0_i32_1 = arith.constant 0 : i32
    return %c0_i32, %c0_i32_0 : i32, i32
  }
  func.func @transform_9(%arg0: i32) -> (i32, i32) {
    %c0_i32 = arith.constant 0 : i32
    %c0_i32_0 = arith.constant 0 : i32
    %c0_i32_1 = arith.constant 0 : i32
    return %c0_i32, %c0_i32_0 : i32, i32
  }
  func.func @transform_10(%arg0: i32) -> (i32, i32) {
    %c0_i32 = arith.constant 0 : i32
    %c0_i32_0 = arith.constant 0 : i32
    %c0_i32_1 = arith.constant 0 : i32
    return %c0_i32, %c0_i32_0 : i32, i32
  }
  func.func @transform_11(%arg0: i32) -> (i32, i32, i32) {
    %c0_i32 = arith.constant 0 : i32
    %c0_i32_0 = arith.constant 0 : i32
    %c0_i32_1 = arith.constant 0 : i32
    return %arg0, %c0_i32, %c0_i32_0 : i32, i32, i32
  }
  func.func @transform_12(%arg0: i32) -> (i32, i32, i32) {
    %c7_i32 = arith.constant 7 : i32
    %0 = arith.subi %c7_i32, %arg0 : i32
    %c0_i32 = arith.constant 0 : i32
    %c0_i32_0 = arith.constant 0 : i32
    %c0_i32_1 = arith.constant 0 : i32
    return %0, %c0_i32, %c0_i32_0 : i32, i32, i32
  }
  func.func @transform_13(%arg0: i32) -> (i32, i32) {
    %c0_i32 = arith.constant 0 : i32
    %c0_i32_0 = arith.constant 0 : i32
    %c0_i32_1 = arith.constant 0 : i32
    return %c0_i32, %c0_i32_0 : i32, i32
  }
  func.func @transform_14(%arg0: i32) -> (i32, i32) {
    %c0_i32 = arith.constant 0 : i32
    %c0_i32_0 = arith.constant 0 : i32
    %c0_i32_1 = arith.constant 0 : i32
    return %c0_i32, %c0_i32_0 : i32, i32
  }
}

</mosaic_0001>

<bundles_post_ra>
// kernel: encoder_forward.1
= control target key start
LH: loop header
LB: loop body
LE: loop exit
PB: predicated region body
PF: predicated region fallthrough
CT: control target
= control target key end

     0   :  { %s1799_s0 = inlined_call_operand.vmem [shape: f32[8,2,96], index: 0, kind: input, shape index: {}]   ;;  %s1800_s1 = inlined_call_operand.vmem [shape: f32[8,2,96], index: 1, kind: input, shape index: {}]   ;;  %s1801_s2 = inlined_call_operand.vmem [shape: f32[8,2,1], index: 2, kind: input, shape index: {}, may-alias: {2,3}]   ;;  %s1802_s3 = inlined_call_operand.vmem [shape: f32[8,2,1], index: 3, kind: input, shape index: {}, may-alias: {2,3}]   ;;  %s1803_s4 = inlined_call_operand.vmem [shape: bf16[32,96], index: 4, kind: input, shape index: {}]   ;;  %s1804_s5 = inlined_call_operand.vmem [shape: bf16[32,96], index: 5, kind: input, shape index: {}]   ;;  %s1805_s6 = inlined_call_operand.vmem [shape: f32[1,96], index: 6, kind: input, shape index: {}]   ;;  %s1806_s7 = inlined_call_operand.vmem [shape: f32[1,96], index: 7, kind: input, shape index: {}]   ;;  %s1807_s8 = inlined_call_operand.vmem [shape: f32[64,32], index: 8, kind: input, shape index: {}]   ;;  %s1808_s9 = inlined_call_operand.vmem [shape: f32[1,32], index: 9, kind: input, shape index: {}]   ;;  %s1809_s10 = inlined_call_operand.vmem [shape: f32[64,16], index: 10, kind: input, shape index: {}]   ;;  %s1810_s11 = inlined_call_operand.vmem [shape: f32[8,2,32], index: 11, kind: output, shape index: {0}]   ;;  %s1811_s12 = inlined_call_operand.vmem [shape: f32[8,2,32], index: 12, kind: output, shape index: {1}]   ;;  %s1812_s13 = inlined_call_operand.hbm [shape: f32[2,32], index: 13, kind: output, shape index: {2}]   ;;  %s1813_s14 = inlined_call_operand.vmem [shape: f32[2,16], index: 14, kind: output, shape index: {3}]  }
   0x1   :  { %1816 = sst [smem:[#allocation8_spill]] %s1812_s13 }
   0x2   :  { %1817 = sst [smem:[#allocation9_spill]] %s1813_s14 }
   0x3   :  { %20 = vsyncpa [#allocation5], 0  ;;  %s1587_s29 = smov 0  }
   0x4 LB: > { %1818 = sst [smem:[#allocation7_spill]] %s1499_s29  ;;  %s1593_s30 = sadd.s32 4294967295, %s1499_s29   ;;  %s1499_s29 = sphi %s1587_s29, %s26_s29  }
   0x5   : > { %p1278_p0 = scmp.ge.s32.totalorder %s1499_s29, 1  ;;  %p446_p1 = scmp.lt.s32.totalorder %s1499_s29, 9 }
   0x7   : > { %p447_p2 = pnand %p1278_p0, %p446_p1 }
   0x8   : > { %p509_p3 = scmp.lt.s32.totalorder (!%p447_p2), %s1593_s30, 7  ;;  %s513_s15 = ssub.s32 (!%p447_p2), 7, %s1593_s30 }
   0x9   : > { %450 = sbr.rel (%p447_p2) target bundleno = 1003 (0x3eb), region = 64  ;;  %p514_p4 = scmp.lt.s32.totalorder (!%p447_p2), %s513_s15, 7 }
   0xa   : > { %p1285_p5 = scmp.ne.s32.totalorder (!%p447_p2), %s1593_s30, 0 }
  0x10   : > { %s510_s16 = scalar_select %p509_p3, %s1593_s30, 7 }
  0x11   : > { %s1824_s15 = smov (!%p514_p4, %s513_s15), 7  ;;  %543 = sbr.rel (%p1285_p5) target bundleno = 24 (0x18), region = 68 }
  0x12   : > { %s1600_s17 = sshll.u32 %s510_s16, 1  ;;  %s1606_s21 = sshll.u32 %s1824_s15, 1  ;;  %vm544_vm0 = vcmask (!%p1285_p5), 254976   ;;  %v1501_v0 = vmov (!%p1285_p5), 0.0  }
  0x13   : > { %s517_s24 = scalar_lea.vmem %s1800_s1, %s1606_s21  ;;  %s522_s27 = scalar_lea.vmem %s1801_s2, %s1600_s17  ;;  %545 = vst.msk [vmem:[#allocation2] sm:$0x3] (!%p1285_p5), %vm544_vm0, %v1501_v0  ;;  %546 = vst.msk [vmem:[#allocation3] sm:$0x3] (!%p1285_p5), %vm544_vm0, %v1501_v0 }
  0x14   : > { %s527_s18 = scalar_lea.vmem %s1802_s3, %s1606_s21  ;;  %s532_s15 = scalar_lea.vmem %s1810_s11, %s1600_s17 }
  0x15   : > { %s537_s14 = scalar_lea.vmem %s1811_s12, %s1606_s21 }
  0x18 PF: > { %v1445_v1 = vld [vmem:[%s1803_s4] sm:$0xff]   ;;  %v1502_v2 = vmov 0.0   ;;  %v1447_v4 = vld [vmem:[%s1803_s4 + $0x8] sm:$0xff]   ;;  %vm1503_vm1 = vmmov 0   ;;  %vm576_vm2 = vcmask 261120   ;;  %v1504_v10 = vmov 0  }
  0x19   : > { %1332 = vmatprep.subr.bf16.mxu0 %v1502_v2  ;;  %1340 = vmatprep.subr.bf16.mxu1 %v1502_v2  ;;  %v1446_v3 = vld [vmem:[%s1804_s5] sm:$0xff]   ;;  %v1448_v5 = vld [vmem:[%s1804_s5 + $0x8] sm:$0xff]   ;;  %s1505_s29 = smov 64   ;;  %s1506_s28 = smov 32   ;;  %vm788_vm3 = vcmask 254976  }
  0x1a   : > { %1333 = vmatpush3.bf16.msra.mxu0 %v1445_v1  ;;  %1336 = vmatprep.mubr.msk.bf16.mxu0 %vm1503_vm1, %v1502_v2  ;;  %v1641_v6 = vld [vmem:[#allocation2] sm:$0x3]  ;;  %v1643_v7 = vld [vmem:[#allocation3] sm:$0x3]  ;;  %p1296_p6 = scmp.ne.s32.totalorder %s1593_s30, 7 }
  0x1b   : > { %1341 = vmatpush3.bf16.msra.mxu1 %v1446_v3  ;;  %1334 = vmatprep.subr.bf16.mxu0 %v1502_v2  ;;  %v552_v8 = vpack.c.bf16 %v1641_v6, %v1641_v6  ;;  %v651_v9 = vpack.c.bf16 %v1643_v7, %v1643_v7  ;;  %v1286_v11 = vld [vmem:[%s1805_s6] ss:$0 sm:$0xff]  ;;  %vm1509_vm4 = vmmov (!%p1296_p6), 0   ;;  %vm1119_vm5 = vcmask (!%p1296_p6), 123904  }
  0x1c   : > { %1342 = vmatprep.subr.bf16.mxu1 %v1502_v2  ;;  %1344 = vmatprep.mubr.msk.bf16.mxu1 %vm1503_vm1, %v1502_v2  ;;  %v1291_v13 = vld [vmem:[%s1806_s7] ss:$0 sm:$0xff] }
  0x1d   : > { %1443 = vset.pattern.permute.xlu0 %v1504_v10  ;;  %1444 = vset.pattern.permute.xlu1 %v1504_v10  ;;  %v547_v23 = vld [vmem:[%s522_s27] sm:$0x3]  ;;  %s1819_s27 = scalar_lea.vmem %s1799_s0, %s1600_s17  ;;  %s1820_s17 = sld [smem:[#allocation9_spill]] (!%p1296_p6) }
  0x1e   : > { %1335 = vmatpush3.bf16.msra.mxu0 %v1447_v4  ;;  %v754_v24 = vsub.f32 1.0, %v547_v23  ;;  %v548_v25 = vld [vmem:[%s527_s18] sm:$0x3] }
  0x1f   : > { %1343 = vmatpush3.bf16.msra.mxu1 %v1448_v5  ;;  %v551_v26 = vld [vmem:[%s1819_s27] sm:$0x3]  ;;  %v772_v42 = vsub.f32 1.0, %v548_v25 }
  0x20   : > { %v650_v28 = vld [vmem:[%s517_s24] sm:$0x3]  ;;  %s1507_s24 = smov 96  }
  0x21   : > { %1337 = vmatmul.mubr.msk.bf16.vlgmr.msra.gmra.mrb[0].mxu0 %vm576_vm2, %v552_v8 }
  0x22   : > { %1345 = vmatmul.mubr.msk.bf16.vlgmr.msra.gmra.mrb[0].mxu1 %vm576_vm2, %v651_v9 }
  0xf4   : > { %v614_v12 = vpop.f32.mrb[0].mxu0 }
  0xf5   : > { %v615_v14 = vadd.f32 %v1286_v11, %v614_v12  ;;  %v1338_v15 = vpop.f32.mrb[1].mxu0  ;;  %v712_v16 = vpop.f32.mrb[0].mxu1 }
  0xf6   : > { %v617_v17 = vpop.f32.mrb[2].mxu0  ;;  %v1346_v18 = vpop.f32.mrb[1].mxu1  ;;  %v713_v19 = vadd.f32 %v1291_v13, %v712_v16  ;;  %v813_v13 = vld [vmem:[%s1807_s8 + $0x20] sm:$0xff] (!%p1296_p6)  ;;  %v815_v15 = vld [vmem:[%s1807_s8 + $0x30] sm:$0xff] (!%p1296_p6)  ;;  %v1508_v16 = vmov (!%p1296_p6), 0.0|0.0  }
  0xf7   : > { %v715_v20 = vpop.f32.mrb[2].mxu1  ;;  %628 = vrot.lane.b32.xlu0 %v615_v14, %s1505_s29  ;;  %v1339_v21 = vpop.f32.mrb[3].mxu0  ;;  %v620_v27 = vadd.f32 %v615_v14, %v551_v26  ;;  %v814_v14 = vld [vmem:[%s1807_s8 + $0x28] sm:$0xff] (!%p1296_p6)  ;;  %1392 = vmatprep.subr.bf16.mxu1 (!%p1296_p6), %v1508_v16  ;;  %v816_v18 = vld [vmem:[%s1807_s8 + $0x38] sm:$0xff] (!%p1296_p6) }
  0xf8   : > { %v1347_v22 = vpop.f32.mrb[3].mxu1  ;;  %v718_v30 = vadd.f32 %v713_v19, %v650_v28  ;;  %v1393_v17 = vpack.c.bf16 (!%p1296_p6), %v814_v14, %v813_v13  ;;  %1404 = vmatprep.subr.bf16.mxu0 (!%p1296_p6), %v1508_v16  ;;  %v976_v20 = vld [vmem:[%s1809_s10 + $0x28] sm:$0xff] (!%p1296_p6)  ;;  %v1510_v21 = vmov (!%p1296_p6), 0.0  }
  0xf9   : > { %v1290_v29 = vmul.f32 -1.442695, %v620_v27  ;;  %1356 = vmatprep.mubr.msk.f32.mxu1 (!%p1296_p6), %vm1509_vm4, %v1510_v21  ;;  %1378 = vmatprep.mubr.msk.f32.mxu0 (!%p1296_p6), %vm1509_vm4, %v1510_v21  ;;  %v810_v27 = vld [vmem:[%s1807_s8 + $0x8] sm:$0xff] (!%p1296_p6) }
  0xfa   : > { %v1295_v31 = vmul.f32 -1.442695, %v718_v30  ;;  %1394 = vmatpush3.bf16.msra.mxu1 (!%p1296_p6), %v1393_v17  ;;  %v972_v30 = vld [vmem:[%s1809_s10 + $0x8] sm:$0xff] (!%p1296_p6) }
  0xfb   : > { %726 = vrot.lane.b32.xlu0 %v713_v19, %s1505_s29  ;;  %1449 = vpow2.f32 %v1290_v29  ;;  %v975_v19 = vld [vmem:[%s1809_s10 + $0x20] sm:$0xff] (!%p1296_p6)  ;;  %1395 = vmatprep.subr.bf16.mxu1 (!%p1296_p6), %v1508_v16 }
  0xfc   : > { %1451 = vpow2.f32 %v1295_v31  ;;  %v1405_v22 = vpack.c.bf16 (!%p1296_p6), %v976_v20, %v975_v19  ;;  %v971_v29 = vld [vmem:[%s1809_s10] sm:$0xff] (!%p1296_p6) }
  0xfe   : > { %1406 = vmatpush3.bf16.msra.mxu0 (!%p1296_p6), %v1405_v22 }
  0xff   : > { %757 = vperm.xlu0 %1443, %v754_v24   ;;  %v1396_v24 = vpack.c.bf16 (!%p1296_p6), %v816_v18, %v815_v15  ;;  %1407 = vmatprep.subr.bf16.mxu0 (!%p1296_p6), %v1508_v16 }
 0x101   : > { %1397 = vmatpush3.bf16.msra.mxu1 (!%p1296_p6), %v1396_v24 }
 0x102   : > { %1398 = vmatprep.subr.bf16.mxu1 (!%p1296_p6), %v1508_v16 }
 0x103   : > { %768 = vperm.xlu0 %1443, %v548_v25   ;;  %v978_v25 = vld [vmem:[%s1809_s10 + $0x38] sm:$0xff] (!%p1296_p6) }
 0x105   : > { %v1450_v32 = vpop.eup %1449 }
 0x106   : > { %v624_v33 = vadd.f32 1.0, %v1450_v32  ;;  %v1452_v34 = vpop.eup %1451  ;;  %v811_v32 = vld [vmem:[%s1807_s8 + $0x10] sm:$0xff] (!%p1296_p6) }
 0x107   : > { %645 = vrot.lane.b32.xlu0 %v1641_v6, %s1506_s28  ;;  %v722_v35 = vadd.f32 1.0, %v1452_v34  ;;  %v1411_v34 = vpack.c.bf16 (!%p1296_p6), %v972_v30, %v971_v29 }
 0x108   : > { %1453 = vrcp.f32 %v624_v33  ;;  %v812_v33 = vld [vmem:[%s1807_s8 + $0x18] sm:$0xff] (!%p1296_p6) }
 0x109   : > { %1455 = vrcp.f32 %v722_v35  ;;  %v973_v35 = vld [vmem:[%s1809_s10 + $0x10] sm:$0xff] (!%p1296_p6) }
 0x10b   : > { %743 = vrot.lane.b32.xlu0 %v1643_v7, %s1506_s28 }
 0x112   : > { %v1454_v36 = vpop.eup %1453 }
 0x113   : > { %v1456_v39 = vpop.eup %1455  ;;  %v638_v56 = vsub.f32 1.0, %v1454_v36 }
 0x114   : > { %v736_v62 = vsub.f32 1.0, %v1456_v39 }
 0x169   : > { %v629_v37 = vpop.permute.xlu0 %628 }
 0x16a   : > { %v631_v38 = vmul.f32 %v1454_v36, %v629_v37  ;;  %v1402_v37 = vpack.c.bf16 (!%p1296_p6), %v812_v33, %v811_v32 }
 0x16c   : > { %633 = vrot.lane.b32.xlu1 %v631_v38, %s1505_s29 }
 0x16d   : > { %v727_v40 = vpop.permute.xlu0 %726 }
 0x16e   : > { %v729_v41 = vmul.f32 %v1456_v39, %v727_v40 }
 0x170   : > { %731 = vrot.lane.b32.xlu1 %v729_v41, %s1505_s29 }
 0x174   : > { %775 = vperm.xlu1 %1444, %v772_v42   ;;  %v1299_v42 = vld [vmem:[%s1808_s9] ss:$0 sm:$0xff] (!%p1296_p6) }
 0x178   : > { %750 = vperm.xlu1 %1444, %v547_v23   ;;  %v977_v23 = vld [vmem:[%s1809_s10 + $0x30] sm:$0xff] (!%p1296_p6) }
 0x17e   : > { %v758_v49 = vpop.permute.xlu0 %757 }
 0x17f   : > { %v760_v50 = vmul.f32 %v758_v49, %v1641_v6 }
 0x182   : > { %v769_v53 = vpop.permute.xlu0 %768 }
 0x186   : > { %v646_v54 = vpop.permute.xlu0 %645 }
 0x187   : > { %v648_v58 = vmul.f32 %v1454_v36, %v646_v54  ;;  %v974_v36 = vld [vmem:[%s1809_s10 + $0x18] sm:$0xff] (!%p1296_p6) }
 0x188   : > { %v1414_v38 = vpack.c.bf16 (!%p1296_p6), %v974_v36, %v973_v35 }
 0x18a   : > { %v744_v60 = vpop.permute.xlu0 %743 }
 0x18b   : > { %v746_v0 = vmul.f32 %v1456_v39, %v744_v60 }
 0x1de   : > { %v634_v43 = vpop.permute.xlu1 %633 }
 0x1df   : > { %v636_v44 = vadd.f32 %v634_v43, %v551_v26  ;;  %v809_v26 = vld [vmem:[%s1807_s8] sm:$0xff] (!%p1296_p6) }
 0x1e0   : > { %v1399_v31 = vpack.c.bf16 (!%p1296_p6), %v810_v27, %v809_v26 }
 0x1e1   : > { %1457 = vtanh.f32 %v636_v44 }
 0x1e2   : > { %v732_v45 = vpop.permute.xlu1 %731 }
 0x1e3   : > { %v734_v46 = vadd.f32 %v732_v45, %v650_v28  ;;  %v1408_v28 = vpack.c.bf16 (!%p1296_p6), %v978_v25, %v977_v23 }
 0x1e5   : > { %1459 = vtanh.f32 %v734_v46  ;;  %1409 = vmatpush3.bf16.msra.mxu0 (!%p1296_p6), %v1408_v28 }
 0x1e6   : > { %1410 = vmatprep.subr.bf16.mxu0 (!%p1296_p6), %v1508_v16 }
 0x1eb   : > { %v1458_v47 = vpop.eup %1457 }
 0x1ec   : > { %640 = vrot.lane.b32.xlu1 %v1458_v47, %s1507_s24 }
 0x1ef   : > { %v1460_v48 = vpop.eup %1459 }
 0x1f0   : > { %738 = vrot.lane.b32.xlu1 %v1460_v48, %s1507_s24 }
 0x1f3   : > { %v776_v51 = vpop.permute.xlu1 %775 }
 0x1f4   : > { %v778_v52 = vmul.f32 %v776_v51, %v1643_v7  ;;  %762 = vrot.lane.b32.xlu1 %v760_v50, %s1506_s28 }
 0x1f6   : > { %780 = vrot.lane.b32.xlu0 %v778_v52, %s1506_s28 }
 0x1f7   : > { %v751_v55 = vpop.permute.xlu1 %750 }
 0x25e   : > { %v641_v57 = vpop.permute.xlu1 %640 }
 0x25f   : > { %v643_v59 = vmul.f32 %v641_v57, %v638_v56 }
 0x261   : > { %v649_v61 = vadd.f32 %v648_v58, %v643_v59 }
 0x262   : > { %v739_v63 = vpop.permute.xlu1 %738 }
 0x263   : > { %v741_v1 = vmul.f32 %v739_v63, %v736_v62  ;;  %v753_v2 = vmul.f32 %v751_v55, %v649_v61 }
 0x265   : > { %v747_v3 = vadd.f32 %v746_v0, %v741_v1  ;;  %785 = vrot.lane.b32.xlu1 %v753_v2, %s1507_s24 }
 0x266   : > { %v763_v4 = vpop.permute.xlu1 %762 }
 0x267   : > { %v765_v5 = vadd.f32 %v763_v4, %v753_v2  ;;  %v771_v6 = vmul.f32 %v769_v53, %v747_v3 }
 0x268   : > { %v781_v7 = vpop.permute.xlu0 %780 }
 0x269   : > { %796 = vrot.lane.b32.xlu1 %v765_v5, %s1507_s24  ;;  %791 = vrot.lane.b32.xlu0 %v771_v6, %s1507_s24  ;;  %v783_v8 = vadd.f32 %v781_v7, %v771_v6 }
 0x26d   : > { %801 = vrot.lane.b32.xlu0 %v783_v8, %s1507_s24 }
 0x2d7   : > { %v786_v9 = vpop.permute.xlu1 %785 }
 0x2d8   : > { %789 = vst.msk [vmem:[%s532_s15] sm:$0x3] %vm788_vm3, %v786_v9 }
 0x2da   : > { %808 = sbr.rel (%p1296_p6) target bundleno = 972 (0x3cc), region = 72 }
 0x2db   : > { %v797_v10 = vpop.permute.xlu1 %796  ;;  %v792_v11 = vpop.permute.xlu0 %791 }
 0x2dc   : > { %799 = vst.msk [vmem:[#allocation2] sm:$0x3] %vm788_vm3, %v797_v10  ;;  %794 = vst.msk [vmem:[%s537_s14] sm:$0x3] %vm788_vm3, %v792_v11 }
 0x2df   : > { %v802_v12 = vpop.permute.xlu0 %801 }
 0x2e0   : > { %804 = vst.msk [vmem:[#allocation3] sm:$0x3] %vm788_vm3, %v802_v12  ;;  %1357 = vmatmul.mubr.msk.f32.vlgmr.msra.gmra.mrb[0].mxu1 (!%p1296_p6), %vm576_vm2, %v802_v12  ;;  %1379 = vmatmul.mubr.msk.f32.vlgmr.msra.gmra.mrb[0].mxu0 (!%p1296_p6), %vm576_vm2, %v802_v12 }
 0x2e1   : > { %1400 = vmatpush3.bf16.msra.mxu1 %v1399_v31  ;;  %1367 = vmatprep.mubr.msk.f32.mxu1 %vm1509_vm4, %v1510_v21 }
 0x2e2   : > { %1401 = vmatprep.subr.bf16.mxu1 %v1508_v16  ;;  %1412 = vmatpush3.bf16.msra.mxu0 %v1411_v34 }
 0x2e3   : > { %1389 = vmatprep.mubr.msk.f32.mxu0 %vm1509_vm4, %v1510_v21  ;;  %1413 = vmatprep.subr.bf16.mxu0 %v1508_v16 }
 0x2e5   : > { %1403 = vmatpush3.bf16.msra.mxu1 %v1402_v37 }
 0x2e6   : > { %1415 = vmatpush3.bf16.msra.mxu0 %v1414_v38 }
 0x2e8   : > { %1368 = vmatmul.mubr.msk.f32.vlgmr.msra.gmra.mrb[2].mxu1 %vm576_vm2, %v797_v10 }
 0x2e9   : > { %1390 = vmatmul.mubr.msk.f32.vlgmr.msra.gmra.mrb[0].mxu0 %vm576_vm2, %v797_v10 }
 0x3b3   : > { %v885_v39 = vpop.f32.mrb[0].mxu1 }
 0x3b4   : > { %v1358_v40 = vpop.f32.mrb[1].mxu1 }
 0x3bb   : > { %v957_v41 = vpop.f32.mrb[2].mxu1 }
 0x3bc   : > { %v958_v43 = vadd.f32 %v957_v41, %v885_v39  ;;  %v1369_v44 = vpop.f32.mrb[3].mxu1  ;;  %v1115_v45 = vpop.f32.mrb[0].mxu0 }
 0x3bd   : > { %1120 = vst.msk [vmem:[%s1820_s17] sm:$0x3] %vm1119_vm5, %v1115_v45  ;;  %v1391_v47 = vpop.f32.mrb[1].mxu0 }
 0x3be   : > { %v968_v46 = vadd.f32 %v1299_v42, %v958_v43 }
 0x3c0   : > { %1461 = vtanh.f32 %v968_v46 }
 0x3ca   : > { %v1462_v48 = vpop.eup %1461 }
 0x3cb   : > { %970 = vst.msk [vmem:[#allocation4] sm:$0x3] %vm788_vm3, %v1462_v48 }
 0x3cc PF: > { %p1422_p7 = scmp.eq.s32.totalorder %s1593_s30, 7  ;;  %s1511_s15 = smov [#allocation4]  }
 0x3cd   : > { %s1144_s28 = sshll.u32 %s1511_s15, 4  ;;  %s1145_s28 = int_to_ptr.vmem [resolvable:$true] %s1144_s28 }
 0x3ce   : > { %s1463_s16 = scalar_lea.vmem %s1145_s28, 32  ;;  %p1470_p11 = scmp.lt.s32.totalorder %s1145_s28, %s1145_s28 }
 0x3cf   : > { %p1464_p8 = scmp.ne.s32.totalorder %s1145_s28, %s1463_s16  ;;  %p1471_p12 = scmp.lt.s32.totalorder %s1463_s16, %s1463_s16 }
 0x3d1   : > { %p1465_p9 = pnand %p1464_p8, %p1422_p7  ;;  %p1472_p13 = por %p1471_p12, %p1470_p11 }
 0x3d3   : > { %p1466_p10 = pneg %p1465_p9 }
 0x3d5   : > { %p1473_p0 = pnand %p1472_p13, %p1466_p10 }
 0x3d7   : > { %1476 = shalt.err (!%p1473_p0)
}
 0x3d8   : > { %s1821_s19 = sld [smem:[#allocation8_spill]] }
 0x3de   : > { %s1477_s27 = scalar_lea.hbm %s1821_s19, 32 }
 0x3df   : > { %p1478_p1 = scmp.ne.s32.totalorder %s1821_s19, %s1477_s27  ;;  %p1483_p4 = scmp.lt.u32.totalorder %s1477_s27, %s1821_s19 }
 0x3e1   : > { %p1479_p2 = pnand %p1478_p1, %p1422_p7 }
 0x3e3   : > { %p1480_p3 = pneg %p1479_p2 }
 0x3e5   : > { %p1485_p5 = pnand %p1483_p4, %p1480_p3 }
 0x3e7   : > { %1488 = shalt.err (!%p1485_p5)
}
 0x3e8   : > { %1419 = dma.vmem_to_hbm [thread:$0]  (%p1422_p7), %s1145_s28, 32, %s1821_s19, [#allocation5]  }
 0x3e9   : > { %1494 = dma.done.wait (%p1422_p7), [#allocation5], 32  }
 0x3ea   : > { %1496 = vsyncadd (%p1422_p7), [#allocation5], 4294967264 }
 0x3eb PF: > { %s1822_s13 = sld [smem:[#allocation7_spill]] }
 0x3f1   : > { %s26_s29 = sadd.s32 1, %s1822_s13  }
 0x3f2   : > { %p23_p6 = scmp.ge.s32.totalorder %s26_s29, 10  }
 0x3f4   :  { %25 = sbr.rel (!%p23_p6) target bundleno = 4 (0x4), region = 140 }
 0x3fb   :  { %1178 = vsyncpa [#allocation5], 1 }
 0x3fc   :  { %1180 = vsyncpa [#allocation5 + $0x1], 1 }

</bundles_post_ra>
